<compile_context>
chip_gen: v5e
topology: v5e:2x2
jax: 0.10.0
libtpu: 0.0.40
codegen_flags: <defaults>
</compile_context>

<pallas_src>
import functools

import jax
import jax.numpy as jnp
from jax import lax
from jax.experimental import pallas as pl
from jax.experimental.pallas import tpu as pltpu


def _head_kernel(x_ref, wkqv_ref, o_ref, *, scale):
    # x_ref block: (BB, T, C) float32 slab covering BB batch elements.
    BB, T, C = x_ref.shape

    # ---- Fused K/Q/V projection (single MXU pass, no transposes) ----------
    # Flatten batch+seq (layout-preserving for T % 8 == 0), cast to bf16 for
    # the MXU, accumulate in f32.
    x2d = x_ref[...].reshape(BB * T, C).astype(jnp.bfloat16)      # (BB*T, C)
    kqv = jnp.dot(x2d, wkqv_ref[...],
                  preferred_element_type=jnp.float32)             # (BB*T, 3C) f32

    k = kqv[:, 0 * C:1 * C].reshape(BB, T, C)
    q = kqv[:, 1 * C:2 * C].reshape(BB, T, C) * scale             # scale q, not attn
    v = kqv[:, 2 * C:3 * C].reshape(BB, T, C)

    # ---- Attention scores: batched q @ k^T without materializing k.T ------
    s = jnp.einsum('bqd,bkd->bqk',
                   q.astype(jnp.bfloat16), k.astype(jnp.bfloat16),
                   preferred_element_type=jnp.float32)            # (BB, T, T) f32

    # Causal (lower-triangular) mask; large finite negative so even a fully
    # masked row could never produce NaN.
    row = lax.broadcasted_iota(jnp.int32, (T, T), 0)
    col = lax.broadcasted_iota(jnp.int32, (T, T), 1)
    s = jnp.where(col <= row, s, jnp.float32(-1e30))

    # ---- Numerically-stable softmax in f32 (exp + reciprocal on the EUP) --
    s = s - jnp.max(s, axis=-1, keepdims=True)
    p = jnp.exp(s)
    wei = p * pl.reciprocal(jnp.sum(p, axis=-1, keepdims=True), approx=True)

    # ---- Weighted sum of values (batched, bf16 MXU, f32 accumulate) -------
    out = jnp.einsum('bqk,bkd->bqd',
                     wei.astype(jnp.bfloat16), v.astype(jnp.bfloat16),
                     preferred_element_type=jnp.float32)          # (BB, T, C)
    o_ref[...] = out.astype(o_ref.dtype)


def _pick_block_b(B, T, target_rows=512):
    """Largest divisor of B such that block_b * T stays a modest tile."""
    block_b = 1
    for cand in range(1, B + 1):
        if B % cand == 0 and cand * T <= max(target_rows, T):
            block_b = cand
    return block_b


def head_forward(x, w_key, w_query, w_value, *, block_b=None):
    """x: (B, T, C); w_*: (C, C) in PyTorch (out_features, in_features) layout."""
    B, T, C = x.shape
    if block_b is None:
        block_b = _pick_block_b(B, T)
    assert B % block_b == 0

    # Fuse and pre-transpose the three projection weights once in the wrapper:
    # y = x @ W.T for each of K/Q/V  ->  x @ [Wk.T | Wq.T | Wv.T]   (C, 3C).
    w_kqv = jnp.concatenate([w_key.T, w_query.T, w_value.T], axis=1)
    w_kqv = w_kqv.astype(jnp.bfloat16)

    kernel = functools.partial(_head_kernel, scale=float(C) ** -0.5)

    return pl.pallas_call(
        kernel,
        out_shape=jax.ShapeDtypeStruct((B, T, C), x.dtype),
        grid_spec=pltpu.PrefetchScalarGridSpec(
            num_scalar_prefetch=0,
            grid=(B // block_b,),
            in_specs=[
                pl.BlockSpec((block_b, T, C), lambda b: (b, 0, 0)),  # x tile
                pl.BlockSpec((C, 3 * C), lambda b: (0, 0)),          # fused W_kqv
            ],
            out_specs=pl.BlockSpec((block_b, T, C), lambda b: (b, 0, 0)),
        ),
        compiler_params=pltpu.CompilerParams(
            dimension_semantics=("parallel",),
            vmem_limit_bytes=64 * 1024 * 1024,
        ),
    )(x, w_kqv)


def head_reference(x, w_key, w_query, w_value):
    """Pure-JAX f32 reference mirroring the PyTorch forward exactly."""
    B, T, C = x.shape
    k = x @ w_key.T
    q = x @ w_query.T
    v = x @ w_value.T
    attn = (q @ jnp.swapaxes(k, -2, -1)) * (C ** -0.5)
    tril = jnp.tril(jnp.ones((T, T), dtype=x.dtype))
    mask = jnp.where(tril == 0, -jnp.inf, attn)
    wei = jax.nn.softmax(mask, axis=-1)
    return wei @ v


if __name__ == "__main__":
    B, T, C = 2, 8, 32  # batch=2, seq=8, n_emd=32

    key = jax.random.PRNGKey(0)
    kx, kk, kq, kv = jax.random.split(key, 4)

    x = jax.random.normal(kx, (B, T, C), dtype=jnp.float32)
    # Deterministic "nn.Linear(n_emd, n_emd, bias=False)" weights, (out, in).
    scale = 1.0 / (C ** 0.5)
    w_key = jax.random.uniform(kk, (C, C), jnp.float32, -scale, scale)
    w_query = jax.random.uniform(kq, (C, C), jnp.float32, -scale, scale)
    w_value = jax.random.uniform(kv, (C, C), jnp.float32, -scale, scale)

    out = head_forward(x, w_key, w_query, w_value)
    out = jax.block_until_ready(out)

    ref = head_reference(x, w_key, w_query, w_value)
    assert out.shape == (B, T, C)
    # bf16 MXU inputs + approx reciprocal -> relaxed tolerance vs f32 reference.
    assert jnp.allclose(out, ref, atol=3e-2, rtol=3e-2), "mismatch vs reference"

    print("KERNEL_OK")
</pallas_src>

<mosaic_0001>
module attributes {stable_mosaic.version = 11 : i64} {
  func.func @_head_kernel(%arg0: i32, %arg1: memref<2x8x32xf32, #tpu.memory_space<vmem>>, %arg2: memref<32x96xbf16, #tpu.memory_space<vmem>>, %arg3: memref<2x8x32xf32, #tpu.memory_space<vmem>>) attributes {dimension_semantics = [#tpu.dimension_semantics<parallel>], iteration_bounds = array<i64: 1>, scalar_prefetch = 0 : i64, scratch_operands = 0 : i64, tpu.core_type = #tpu.core_type<tc>, window_params = [{transform_indices = @transform_0, window_bounds = array<i64: 2, 8, 32>}, {pipeline_mode = #tpu.pipeline_mode<synchronous>, transform_indices = @transform_1, window_bounds = array<i64: 32, 96>}, {transform_indices = @transform_2, window_bounds = array<i64: 2, 8, 32>}]} {
    %c0 = arith.constant 0 : index
    %c0_0 = arith.constant 0 : index
    %c0_1 = arith.constant 0 : index
    %0 = vector.load %arg1[%c0, %c0_0, %c0_1] : memref<2x8x32xf32, #tpu.memory_space<vmem>>, vector<2x8x32xf32>
    %1 = vector.shape_cast %0 : vector<2x8x32xf32> to vector<16x32xf32>
    %2 = arith.truncf %1 : vector<16x32xf32> to vector<16x32xbf16>
    %c0_2 = arith.constant 0 : index
    %c0_3 = arith.constant 0 : index
    %3 = vector.load %arg2[%c0_2, %c0_3] : memref<32x96xbf16, #tpu.memory_space<vmem>>, vector<32x96xbf16>
    %cst = arith.constant dense<0.000000e+00> : vector<16x96xf32>
    %4 = tpu.matmul %2, %3, %cst {dimension_numbers = #tpu.dot_dimension_numbers<[1], [0], [0], [1], [0, 0, 1, 1], [], []>} : vector<16x32xbf16>, vector<32x96xbf16>, vector<16x96xf32> -> vector<16x96xf32>
    %5 = vector.extract_strided_slice %4 {offsets = [0, 0], sizes = [16, 32], strides = [1, 1]} : vector<16x96xf32> to vector<16x32xf32>
    %6 = vector.shape_cast %5 : vector<16x32xf32> to vector<2x8x32xf32>
    %7 = vector.extract_strided_slice %4 {offsets = [0, 32], sizes = [16, 32], strides = [1, 1]} : vector<16x96xf32> to vector<16x32xf32>
    %8 = vector.shape_cast %7 : vector<16x32xf32> to vector<2x8x32xf32>
    %cst_4 = arith.constant 0.176776692 : f32
    %9 = vector.broadcast %cst_4 : f32 to vector<2x8x32xf32>
    %10 = arith.mulf %8, %9 : vector<2x8x32xf32>
    %11 = vector.extract_strided_slice %4 {offsets = [0, 64], sizes = [16, 32], strides = [1, 1]} : vector<16x96xf32> to vector<16x32xf32>
    %12 = vector.shape_cast %11 : vector<16x32xf32> to vector<2x8x32xf32>
    %13 = arith.truncf %10 : vector<2x8x32xf32> to vector<2x8x32xbf16>
    %14 = arith.truncf %6 : vector<2x8x32xf32> to vector<2x8x32xbf16>
    "tpu.trace_start"() <{level = 10 : i32, message = "bqd,bkd->bqk"}> : () -> ()
    %cst_5 = arith.constant dense<0.000000e+00> : vector<2x8x8xf32>
    %15 = tpu.matmul %13, %14, %cst_5 {dimension_numbers = #tpu.dot_dimension_numbers<[2], [2], [1], [1], [0, 0, 0, 1, 1, 1], [0], [0]>} : vector<2x8x32xbf16>, vector<2x8x32xbf16>, vector<2x8x8xf32> -> vector<2x8x8xf32>
    "tpu.trace_stop"() : () -> ()
    %16 = tpu.iota {dimensions = array<i32: 0>} : vector<8x8xi32>
    %17 = tpu.iota {dimensions = array<i32: 1>} : vector<8x8xi32>
    %18 = arith.cmpi sle, %17, %16 : vector<8x8xi32>
    %cst_6 = arith.constant -1.000000e+30 : f32
    %19 = vector.shape_cast %18 : vector<8x8xi1> to vector<1x8x8xi1>
    %20 = vector.broadcast %19 : vector<1x8x8xi1> to vector<2x8x8xi1>
    %21 = vector.broadcast %cst_6 : f32 to vector<2x8x8xf32>
    %22 = arith.select %20, %15, %21 : vector<2x8x8xi1>, vector<2x8x8xf32>
    %cst_7 = arith.constant dense<0xFF800000> : vector<2x8xf32>
    %23 = vector.multi_reduction <maximumf>, %22, %cst_7 [2] : vector<2x8x8xf32> to vector<2x8xf32>
    %24 = vector.shape_cast %23 : vector<2x8xf32> to vector<2x8x1xf32>
    %25 = vector.broadcast %24 : vector<2x8x1xf32> to vector<2x8x8xf32>
    %26 = arith.subf %22, %25 : vector<2x8x8xf32>
    %27 = math.exp %26 : vector<2x8x8xf32>
    %cst_8 = arith.constant dense<0.000000e+00> : vector<2x8xf32>
    %28 = vector.multi_reduction <add>, %27, %cst_8 [2] : vector<2x8x8xf32> to vector<2x8xf32>
    %29 = vector.shape_cast %28 : vector<2x8xf32> to vector<2x8x1xf32>
    %30 = tpu.reciprocal %29 {approx = true} : vector<2x8x1xf32> -> vector<2x8x1xf32>
    %31 = vector.broadcast %30 : vector<2x8x1xf32> to vector<2x8x8xf32>
    %32 = arith.mulf %27, %31 : vector<2x8x8xf32>
    %33 = arith.truncf %32 : vector<2x8x8xf32> to vector<2x8x8xbf16>
    %34 = arith.truncf %12 : vector<2x8x32xf32> to vector<2x8x32xbf16>
    "tpu.trace_start"() <{level = 10 : i32, message = "bqk,bkd->bqd"}> : () -> ()
    %cst_9 = arith.constant dense<0.000000e+00> : vector<2x8x32xf32>
    %35 = tpu.matmul %33, %34, %cst_9 {dimension_numbers = #tpu.dot_dimension_numbers<[2], [1], [1], [2], [0, 0, 0, 1, 1, 2], [0], [0]>} : vector<2x8x8xbf16>, vector<2x8x32xbf16>, vector<2x8x32xf32> -> vector<2x8x32xf32>
    "tpu.trace_stop"() : () -> ()
    %c0_10 = arith.constant 0 : index
    %c0_11 = arith.constant 0 : index
    %c0_12 = arith.constant 0 : index
    %36 = vector.load %arg3[%c0_10, %c0_11, %c0_12] : memref<2x8x32xf32, #tpu.memory_space<vmem>>, vector<2x8x32xf32>
    tpu.vector_store %arg3[%c0_10, %c0_11, %c0_12], %35 {strides = array<i32>} : memref<2x8x32xf32, #tpu.memory_space<vmem>>, vector<2x8x32xf32>,
    return
  }
  func.func @transform_0(%arg0: i32) -> (i32, i32, i32) {
    %c0_i32 = arith.constant 0 : i32
    %c0_i32_0 = arith.constant 0 : i32
    %c0_i32_1 = arith.constant 0 : i32
    return %arg0, %c0_i32, %c0_i32_0 : i32, i32, i32
  }
  func.func @transform_1(%arg0: i32) -> (i32, i32) {
    %c0_i32 = arith.constant 0 : i32
    %c0_i32_0 = arith.constant 0 : i32
    %c0_i32_1 = arith.constant 0 : i32
    return %c0_i32, %c0_i32_0 : i32, i32
  }
  func.func @transform_2(%arg0: i32) -> (i32, i32, i32) {
    %c0_i32 = arith.constant 0 : i32
    %c0_i32_0 = arith.constant 0 : i32
    %c0_i32_1 = arith.constant 0 : i32
    return %arg0, %c0_i32, %c0_i32_0 : i32, i32, i32
  }
}

</mosaic_0001>

<bundles_post_ra>
// kernel: tpu_custom_call.1
= control target key start
LH: loop header
LB: loop body
LE: loop exit
PB: predicated region body
PF: predicated region fallthrough
CT: control target
= control target key end

     0   :  { %7 = vsyncpa [#allocation3], 0  ;;  %s405_s0 = inlined_call_operand.hbm [shape: f32[2,8,32], index: 0, kind: input, shape index: {}]   ;;  %s406_s1 = inlined_call_operand.hbm [shape: bf16[32,96], index: 1, kind: input, shape index: {}]   ;;  %s407_s2 = inlined_call_operand.hbm [shape: f32[2,8,32], index: 2, kind: output, shape index: {}]  }
   0x1   :  { %8 = vsyncpa [#allocation6], 0 }
   0x2   :  { %9 = vsyncpa [#allocation4], 0  ;;  %s14_s11 = sshll.u32 %s405_s0, 4  ;;  %s350_s12 = smov [#allocation2]   ;;  %s15_s11 = int_to_ptr.hbm [resolvable:$true] %s14_s11 }
   0x3   :  { %s16_s13 = sshll.u32 %s350_s12, 4  ;;  %s27_s16 = sshll.u32 %s406_s1, 4  ;;  %s17_s13 = int_to_ptr.vmem [resolvable:$true] %s16_s13  ;;  %s28_s16 = int_to_ptr.hbm [resolvable:$true] %s27_s16 }
   0x4   :  { %s351_s17 = smov 128   ;;  %s352_s18 = smov 8  }
   0x5   :  { %22 = dma.hbm_to_vmem [thread:$0]  %s15_s11, 256, %s17_s13, [#allocation3], %s351_s17, %s351_s17, %s352_s18  }
   0x6   :  { %s353_s19 = smov [#allocation5]   ;;  %s354_s21 = smov 64  }
   0x7   :  { %s29_s20 = sshll.u32 %s353_s19, 4  ;;  %s355_s0 = smov 4   ;;  %s30_s20 = int_to_ptr.vmem [resolvable:$true] %s29_s20 }
   0x8   :  { %35 = dma.hbm_to_vmem [thread:$0]  %s28_s16, 256, %s30_s20, [#allocation6], %s354_s21, %s354_s21, %s355_s0  }
   0x9   :  { %344 = dma.done.wait [#allocation3], 256  }
   0xa   :  { %345 = vsyncadd [#allocation3], 4294967040 }
   0xb   :  { %346 = dma.done.wait [#allocation6], 256  }
   0xc   :  { %347 = vsyncadd [#allocation6], 4294967040  ;;  %v255_v0 = vld [vmem:[#allocation5 + $0x8] sm:$0xff]  ;;  %v254_v1 = vld [vmem:[#allocation5] sm:$0xff]  ;;  %vm64_vm0 = vcmask 261120   ;;  %s356_s1 = smov 96   ;;  %v136_v21 = vlaneseq }
   0xd   :  { %74 = vmatpush.bf16.msra.mxu0 %v255_v0  ;;  %v45_v2 = vld [vmem:[#allocation2] sm:$0xff]  ;;  %v46_v3 = vld [vmem:[#allocation2 + $0x8] sm:$0xff]  ;;  %vm145_vm2 = vcmask 64512   ;;  %vm178_vm3 = vcmask 1043456   ;;  %s357_s22 = smov [#allocation7]   ;;  %s227_s26 = sshll.u32 %s407_s2, 4  ;;  %s228_s26 = int_to_ptr.hbm [resolvable:$true] %s227_s26 }
   0xe   :  { %v47_v4 = vpack.c.bf16 %v46_v3, %v45_v2  ;;  %v137_v22 = vshrl.u32 %v136_v21, 7  ;;  %v139_v23 = vand.u32 127, %v136_v21  ;;  %s225_s23 = sshll.u32 %s357_s22, 4  ;;  %s226_s23 = int_to_ptr.vmem [resolvable:$true] %s225_s23 }
  0x10   :  { %vm140_vm1 = vcmp.le.s32.totalorder %v139_v23, %v137_v22 }
  0x11   :  { %75 = vmatpush.bf16.msra.mxu0 %v254_v1 }
  0x14   :  { %249 = vmatmul.msk.bf16.vlgmr.msra.gmra.mxu0 %vm64_vm0, %v47_v4 }
  0x91   :  { %v77_v5 = vpop.f32.mrf.mxu0 }
  0x92   :  { %v82_v6 = vmul.f32 0.17677669, %v77_v5  ;;  %v86_v7 = vpack.c.bf16 %v77_v5, %v77_v5 }
  0x94   :  { %v84_v8 = vpack.c.bf16 %v82_v6, %v82_v6  ;;  %v97_v9 = vsel %vm64_vm0, %v86_v7, 0  ;;  %v171_v44 = vunpack.c.l.b16 %v86_v7 }
  0x95   :  { %106 = vmatpush.bf16.xpose.msra.mxu1 %v97_v9 }
  0x96   :  { %v89_v10 = vunpack.c.l.b16 %v84_v8  ;;  %v172_v45 = vpack.c.b16 %v171_v44, %v171_v44 }
  0x98   :  { %v90_v11 = vpack.c.b16 %v89_v10, %v89_v10 }
  0x99   :  { %v79_v12 = vpop.f32.mrf.mxu0 }
  0x9a   :  { %v83_v13 = vmul.f32 0.17677669, %v79_v12  ;;  %v87_v14 = vpack.c.bf16 %v79_v12, %v79_v12  ;;  %91 = vrot.lane.b32.xlu0 %v90_v11, %s356_s1 }
  0x9c   :  { %v85_v15 = vpack.c.bf16 %v83_v13, %v83_v13  ;;  %v121_v16 = vsel %vm64_vm0, %v87_v14, 0  ;;  %v196_v32 = vunpack.c.l.b16 %v87_v14 }
  0x9d   :  { %130 = vmatpush.bf16.xpose.msra.mxu2 %v121_v16 }
  0x9e   :  { %v113_v17 = vunpack.c.l.b16 %v85_v15  ;;  %v197_v33 = vpack.c.b16 %v196_v32, %v196_v32 }
  0xa0   :  { %v114_v18 = vpack.c.b16 %v113_v17, %v113_v17 }
  0xa2   :  { %115 = vrot.lane.b32.xlu0 %v114_v18, %s356_s1 }
 0x10c   :  { %v92_v19 = vpop.permute.xlu0 %91 }
 0x10d   :  { %250 = vmatmul.msk.bf16.vlgmr.msra.gmra.mxu1 %vm64_vm0, %v92_v19 }
 0x114   :  { %v116_v20 = vpop.permute.xlu0 %115 }
 0x115   :  { %251 = vmatmul.msk.bf16.vlgmr.msra.gmra.mxu2 %vm64_vm0, %v116_v20 }
 0x18a   :  { %v108_v24 = vpop.f32.mrf.mxu1 }
 0x18b   :  { %v143_v25 = vsel %vm140_vm1, %v108_v24, -1e+30 }
 0x18c   :  { %v146_v26 = vsel %vm145_vm2, %v143_v25, -inf }
 0x18d   :  { %147 = vmax.xlane.f32.xlu1 %v146_v26 }
 0x192   :  { %v110_v27 = vpop.f32.mrf.mxu1 }
 0x198   :  { %v132_v28 = vpop.f32.mrf.mxu2 }
 0x199   :  { %v144_v29 = vsel %vm140_vm1, %v132_v28, -1e+30 }
 0x19a   :  { %v149_v30 = vsel %vm145_vm2, %v144_v29, -inf }
 0x19b   :  { %150 = vmax.xlane.f32.xlu1 %v149_v30 }
 0x1a0   :  { %v134_v31 = vpop.f32.mrf.mxu2 }
 0x1b4   :  { %198 = vrot.lane.b32.xlu1 %v197_v33, %s354_s21 }
 0x200   :  { %v148_v34 = vpop.xlane.xlu1 %147 }
 0x201   :  { %v152_v35 = vsub.f32 %v143_v25, %v148_v34 }
 0x203   :  { %v154_v36 = vmul.f32 1.442695, %v152_v35 }
 0x205   :  { %264 = vpow2.f32 %v154_v36 }
 0x20b   :  { %v265_v37 = vpop.eup %264 }
 0x20c   :  { %v158_v38 = vsel %vm145_vm2, %v265_v37, 0.0 }
 0x20d   :  { %159 = vadd.xlane.f32.xlu2 %v158_v38 }
 0x20e   :  { %v151_v39 = vpop.xlane.xlu1 %150 }
 0x20f   :  { %v153_v40 = vsub.f32 %v144_v29, %v151_v39 }
 0x211   :  { %v156_v41 = vmul.f32 1.442695, %v153_v40 }
 0x213   :  { %266 = vpow2.f32 %v156_v41 }
 0x219   :  { %v267_v42 = vpop.eup %266 }
 0x21a   :  { %v161_v43 = vsel %vm145_vm2, %v267_v42, 0.0 }
 0x21b   :  { %162 = vadd.xlane.f32.xlu0 %v161_v43 }
 0x225   :  { %173 = vrot.lane.b32.xlu2 %v172_v45, %s354_s21 }
 0x226   :  { %v199_v48 = vpop.permute.xlu1 %198 }
 0x227   :  { %v204_v52 = vsel %vm178_vm3, %v199_v48, 0 }
 0x280   :  { %v160_v46 = vpop.xlane.xlu2 %159 }
 0x281   :  { %268 = vrcp.f32 %v160_v46 }
 0x287   :  { %v269_v47 = vpop.eup %268 }
 0x288   :  { %v174_v49 = vpop.permute.xlu2 %173  ;;  %v166_v50 = vmul.f32 %v269_v47, %v265_v37 }
 0x289   :  { %v180_v51 = vsel %vm178_vm3, %v174_v49, 0 }
 0x28a   :  { %189 = vmatpush.bf16.msra.mxu3 %v180_v51  ;;  %v168_v53 = vpack.c.bf16 %v166_v50, %v166_v50 }
 0x28d   :  { %252 = vmatmul.msk.bf16.vlgmr.msra.gmra.mxu3 %vm145_vm2, %v168_v53 }
 0x28e   :  { %213 = vmatpush.bf16.msrb.mxu3 %v204_v52  ;;  %v163_v54 = vpop.xlane.xlu0 %162 }
 0x28f   :  { %270 = vrcp.f32 %v163_v54 }
 0x295   :  { %v271_v55 = vpop.eup %270 }
 0x296   :  { %v167_v56 = vmul.f32 %v271_v55, %v267_v42 }
 0x298   :  { %v169_v57 = vpack.c.bf16 %v167_v56, %v167_v56 }
 0x29d   :  { %253 = vmatmul.msk.bf16.vlgmr.msrb.gmra.mxu3 %vm145_vm2, %v169_v57 }
 0x310   :  { %v191_v58 = vpop.f32.mrf.mxu3 }
 0x311   :  { %219 = vst.msk [vmem:[#allocation7] sm:$0xff] %vm64_vm0, %v191_v58 }
 0x318   :  { %v193_v59 = vpop.f32.mrf.mxu3 }
 0x320   :  { %v215_v60 = vpop.f32.mrf.mxu3 }
 0x321   :  { %220 = vst.msk [vmem:[#allocation7 + $0x8] sm:$0xff] %vm64_vm0, %v215_v60 }
 0x322   :  { %233 = dma.vmem_to_hbm [thread:$0]  %s226_s23, 256, %s228_s26, [#allocation4], %s351_s17, %s351_s17, %s352_s18  }
 0x328   :  { %v217_v61 = vpop.f32.mrf.mxu3 }
 0x329   :  { %348 = dma.done.wait [#allocation4], 256  }
 0x32a   :  { %349 = vsyncadd [#allocation4], 4294967040 }
 0x32b   :  { %238 = vsyncpa [#allocation3], 1 }
 0x32c   :  { %239 = vsyncpa [#allocation6], 1 }
 0x32d   :  { %240 = vsyncpa [#allocation4], 1 }

</bundles_post_ra>
